<compile_context>
chip_gen: v7x
topology: tpu7x:2x2x1
jax: 0.10.0
libtpu: 0.0.40
codegen_flags: <defaults>
</compile_context>

<pallas_src>
import functools

import jax
import jax.numpy as jnp
from jax.experimental import pallas as pl
from jax.experimental.pallas import tpu as pltpu

EPS = 1e-5     # torch.nn.LayerNorm default
MARG = 128     # lane margin around the padded image; multiple of 128 => aligned hpad stores


# ----------------------------- Pallas kernel -----------------------------

def _res_block_kernel(x_ref, mask_ref, w1s_ref, b1s_ref, g1_ref, be1_ref,
                      gsc_ref, besc_ref, w2_ref, b2_ref, g2_ref, be2_ref,
                      o_ref, taps1_ref, taps2_ref, hpad_ref,
                      *, H, W, cout, cinp, coutp, Lpad, slab_dtype):
    """One batch sample per grid step, fully fused in VMEM.

    x_ref:    (1, cinp, La)       zero-padded flattened spatial with MARG zero lanes per side
    mask_ref: (1, Lpad)           1.0 at interior (HxW) pixels, 0.0 at every pad lane
    w1s_ref:  (2*coutp, 9*cinp)   [conv1 ; expanded 1x1 shortcut] in tap-major layout
    b1s_ref:  (2*coutp, 1)        their biases
    w2_ref:   (coutp, 9*coutp), b2_ref: (coutp, 1)
    g*/be*:   (coutp, Lpad)       LayerNorm affine, zero at every pad lane / pad channel
    o_ref:    (1, coutp, Lpad)    output on the padded grid (wrapper strips border / pads)
    scratch:  taps1 (9*cinp, Lpad), taps2 (9*coutp, Lpad), hpad (coutp, La)
    """
    Wp = W + 2
    inv_n = 1.0 / float(cout * H * W)          # true LayerNorm element count
    mask = mask_ref[...]                       # (1, Lpad) f32

    def layer_norm(y, g_ref, be_ref):
        # One-pass stats over the cout*H*W interior; pad lanes / pad channels are masked out
        # (they are exactly zero pre-mask anyway).  var clamped against cancellation.
        ym = y * mask
        mean = jnp.sum(ym) * inv_n
        var = jnp.maximum(jnp.sum(ym * ym) * inv_n - mean * mean, 0.0)
        # gamma/beta are zero at every pad position -> pad lanes come out exactly 0 again.
        return (ym - mean) * jax.lax.rsqrt(var + EPS) * g_ref[...] + be_ref[...]

    # ---- im2col slab for conv1: tap t occupies sublane-aligned rows [t*cinp, (t+1)*cinp);
    #      each store is a full (cinp, Lpad) unmasked store (Lpad % 128 == 0, cinp % 8 == 0).
    for ky in range(3):
        for kx in range(3):
            off = MARG + (ky - 1) * Wp + (kx - 1)          # static lane offset
            taps1_ref[pl.ds((ky * 3 + kx) * cinp, cinp), :] = x_ref[0, :, pl.ds(off, Lpad)]

    # ---- conv1 AND the 1x1 shortcut in ONE MXU matmul: M=2*coutp, K=9*cinp, N=Lpad ----
    y = jnp.dot(w1s_ref[...], taps1_ref[...],
                preferred_element_type=jnp.float32) + b1s_ref[...]       # f32
    sc = layer_norm(y[coutp:, :], gsc_ref, besc_ref)                     # shortcut (no ReLU)
    h = jnp.maximum(layer_norm(y[:coutp, :], g1_ref, be1_ref), 0.0)      # main, pad lanes = 0

    # ---- h back onto the margined padded grid; all three stores are lane-aligned.
    #      Margins re-zeroed every step (persistent scratch + "parallel" grid => a second
    #      core never sees program_id==0, so a pl.when(pid==0) hoist would be unsafe).
    zeros_m = jnp.zeros((coutp, MARG), slab_dtype)
    hpad_ref[:, pl.ds(0, MARG)] = zeros_m
    hpad_ref[:, pl.ds(MARG + Lpad, MARG)] = zeros_m
    hpad_ref[:, pl.ds(MARG, Lpad)] = h.astype(slab_dtype)

    # ---- im2col slab for conv2 (same aligned layout) ----
    for ky in range(3):
        for kx in range(3):
            off = MARG + (ky - 1) * Wp + (kx - 1)
            taps2_ref[pl.ds((ky * 3 + kx) * coutp, coutp), :] = hpad_ref[:, pl.ds(off, Lpad)]

    # ---- conv2 (single matmul) + LN + ReLU, fused residual add.  dropout p=0.0 == identity.
    y2 = jnp.dot(w2_ref[...], taps2_ref[...],
                 preferred_element_type=jnp.float32) + b2_ref[...]
    o_ref[0] = jnp.maximum(layer_norm(y2, g2_ref, be2_ref), 0.0) + sc


# ------------------------------- JAX glue --------------------------------

def _round_up(n, m):
    return -(-n // m) * m


def _tap_major(w, o_pad, c_pad):
    """(O, C, 3, 3) -> (o_pad, 9*c_pad): column t*c_pad + c = w[o, c, ky, kx], t = ky*3+kx.
    Pad output rows / input channels with zeros up to the 8-aligned sizes."""
    O, C = w.shape[0], w.shape[1]
    wt = jnp.transpose(w, (0, 2, 3, 1))                                   # (O, 3, 3, C)
    wt = jnp.pad(wt, ((0, o_pad - O), (0, 0), (0, 0), (0, c_pad - C)))
    return wt.reshape(o_pad, 9 * c_pad)


@functools.partial(jax.jit, static_argnames=("compute_dtype",))
def res_conv_block_forward(x, params, compute_dtype=jnp.bfloat16):
    """x: (B, Cin, H, W) float32 -> (B, Cout, H, W) float32."""
    B, Cin, H, W = x.shape
    Cout = params["w1"].shape[0]
    cinp, coutp = _round_up(Cin, 8), _round_up(Cout, 8)     # sublane-aligned channel counts
    Hp, Wp = H + 2, W + 2
    Lp = Hp * Wp
    Lpad = _round_up(Lp, 128)                  # lane-dense last dim (unmasked stores, MXU N)
    La = Lpad + 2 * MARG                       # margined lane axis (also a multiple of 128)
    cdt = compute_dtype

    # input: conv zero-pad, channel-pad to cinp, flatten spatial onto lanes, add zero margins
    xp = jnp.pad(x, ((0, 0), (0, cinp - Cin), (1, 1), (1, 1))).reshape(B, cinp, Lp)
    x_la = jnp.pad(xp, ((0, 0), (0, 0), (MARG, La - MARG - Lp))).astype(cdt)

    # interior-pixel mask (1 inside the HxW image, 0 at every conv-pad / lane-pad position)
    mask = jnp.pad(jnp.pad(jnp.ones((H, W), jnp.float32), ((1, 1), (1, 1))).reshape(1, Lp),
                   ((0, 0), (0, Lpad - Lp)))

    # conv weights in tap-major layout; the 1x1 shortcut becomes a center-only 3x3 and is
    # stacked under conv1 so both run in a single MXU matmul.
    w1t = _tap_major(params["w1"], coutp, cinp)
    wsct = _tap_major(jnp.pad(params["w_sc"], ((0, 0), (0, 0), (1, 1), (1, 1))), coutp, cinp)
    w1s = jnp.concatenate([w1t, wsct], axis=0).astype(cdt)          # (2*coutp, 9*cinp)
    w2t = _tap_major(params["w2"], coutp, coutp).astype(cdt)        # (coutp, 9*coutp)

    pad_b = lambda b: jnp.pad(b, (0, coutp - Cout))[:, None].astype(jnp.float32)
    b1s = jnp.concatenate([pad_b(params["b1"]), pad_b(params["b_sc"])], axis=0)
    b2 = pad_b(params["b2"])

    def pad_affine(p):  # (Cout, H, W) -> (coutp, Lpad); zero at every pad position
        q = jnp.pad(p, ((0, coutp - Cout), (1, 1), (1, 1))).reshape(coutp, Lp)
        return jnp.pad(q, ((0, 0), (0, Lpad - Lp))).astype(jnp.float32)

    g1, be1 = pad_affine(params["g1"]), pad_affine(params["beta1"])
    g2, be2 = pad_affine(params["g2"]), pad_affine(params["beta2"])
    gsc, besc = pad_affine(params["g_sc"]), pad_affine(params["beta_sc"])

    kernel = functools.partial(_res_block_kernel, H=H, W=W, cout=Cout,
                               cinp=cinp, coutp=coutp, Lpad=Lpad, slab_dtype=cdt)
    cst = lambda i: (0, 0)

    grid_spec = pltpu.PrefetchScalarGridSpec(
        num_scalar_prefetch=0,
        grid=(B,),
        in_specs=[
            pl.BlockSpec((1, cinp, La), lambda i: (i, 0, 0)),   # x (padded-flat + margins)
            pl.BlockSpec((1, Lpad), cst),                       # interior mask
            pl.BlockSpec((2 * coutp, 9 * cinp), cst),           # conv1 + shortcut weights
            pl.BlockSpec((2 * coutp, 1), cst),                  # conv1 + shortcut biases
            pl.BlockSpec((coutp, Lpad), cst),                   # gamma1
            pl.BlockSpec((coutp, Lpad), cst),                   # beta1
            pl.BlockSpec((coutp, Lpad), cst),                   # gamma_sc
            pl.BlockSpec((coutp, Lpad), cst),                   # beta_sc
            pl.BlockSpec((coutp, 9 * coutp), cst),              # conv2 weights
            pl.BlockSpec((coutp, 1), cst),                      # conv2 bias
            pl.BlockSpec((coutp, Lpad), cst),                   # gamma2
            pl.BlockSpec((coutp, Lpad), cst),                   # beta2
        ],
        out_specs=pl.BlockSpec((1, coutp, Lpad), lambda i: (i, 0, 0)),
        scratch_shapes=[
            pltpu.VMEM((9 * cinp, Lpad), cdt),                  # conv1 im2col slab
            pltpu.VMEM((9 * coutp, Lpad), cdt),                 # conv2 im2col slab
            pltpu.VMEM((coutp, La), cdt),                       # h on the margined grid
        ],
    )

    # Budget VMEM per generation (v7x: 64 MiB physical, v5e/v6e: 128 MiB), with a safe fallback.
    try:
        vmem_cap = int(pltpu.get_tpu_info().vmem_capacity_bytes)
    except Exception:
        vmem_cap = 64 * 1024 * 1024
    vmem_limit = max(32 * 1024 * 1024, min(vmem_cap * 3 // 4, 100 * 1024 * 1024))

    out_p = pl.pallas_call(
        kernel,
        out_shape=jax.ShapeDtypeStruct((B, coutp, Lpad), jnp.float32),
        grid_spec=grid_spec,
        compiler_params=pltpu.CompilerParams(
            dimension_semantics=("parallel",),       # >=2 parallel steps -> both v7x TCs
            vmem_limit_bytes=vmem_limit),
    )(x_la, mask, w1s, b1s, g1, be1, gsc, besc, w2t, b2, g2, be2)

    # strip channel padding + the conv padding carried on the lane axis inside the kernel
    return out_p[:, :Cout, :Lp].reshape(B, Cout, Hp, Wp)[:, :, 1:H + 1, 1:W + 1]


# --------------------------- pure-JAX reference ---------------------------

def _ref_conv2d(x, w, b, padding):
    y = jax.lax.conv_general_dilated(
        x, w, window_strides=(1, 1),
        padding=[(padding, padding), (padding, padding)],
        dimension_numbers=("NCHW", "OIHW", "NCHW"),
        precision=jax.lax.Precision.HIGHEST)
    return y + b[None, :, None, None]


def _ref_layernorm(x, g, b):
    mean = x.mean(axis=(1, 2, 3), keepdims=True)
    var = ((x - mean) ** 2).mean(axis=(1, 2, 3), keepdims=True)
    return (x - mean) / jnp.sqrt(var + EPS) * g[None] + b[None]


def res_conv_block_reference(x, p):
    sc = _ref_layernorm(_ref_conv2d(x, p["w_sc"], p["b_sc"], 0), p["g_sc"], p["beta_sc"])
    h = jax.nn.relu(_ref_layernorm(_ref_conv2d(x, p["w1"], p["b1"], 1), p["g1"], p["beta1"]))
    h = jax.nn.relu(_ref_layernorm(_ref_conv2d(h, p["w2"], p["b2"], 1), p["g2"], p["beta2"]))
    return h + sc


# --------------------------------- main -----------------------------------

if __name__ == "__main__":
    B, Cin, Cout, H, W = 2, 4, 8, 16, 16

    key = jax.random.PRNGKey(0)
    ks = jax.random.split(key, 13)

    def rnd(k, shape, scale=0.1):
        return scale * jax.random.normal(k, shape, dtype=jnp.float32)

    params = {
        # main branch
        "w1": rnd(ks[0], (Cout, Cin, 3, 3)),
        "b1": rnd(ks[1], (Cout,)),
        "g1": 1.0 + rnd(ks[2], (Cout, H, W)),
        "beta1": rnd(ks[3], (Cout, H, W)),
        "w2": rnd(ks[4], (Cout, Cout, 3, 3)),
        "b2": rnd(ks[5], (Cout,)),
        "g2": 1.0 + rnd(ks[6], (Cout, H, W)),
        "beta2": rnd(ks[7], (Cout, H, W)),
        # shortcut
        "w_sc": rnd(ks[8], (Cout, Cin, 1, 1)),
        "b_sc": rnd(ks[9], (Cout,)),
        "g_sc": 1.0 + rnd(ks[10], (Cout, H, W)),
        "beta_sc": rnd(ks[11], (Cout, H, W)),
    }

    x = jax.random.normal(ks[12], (B, Cin, H, W), dtype=jnp.float32)

    ref = jax.block_until_ready(res_conv_block_reference(x, params))

    # f32 path: bit-tight check of the fused kernel's structure.
    out32 = jax.block_until_ready(
        res_conv_block_forward(x, params, compute_dtype=jnp.float32))
    assert out32.shape == (B, Cout, H, W), out32.shape
    err32 = float(jnp.max(jnp.abs(out32 - ref)))
    assert jnp.allclose(out32, ref, rtol=5e-4, atol=5e-4), "f32 max abs err = %e" % err32

    # bf16 MXU path (default): looser tolerance for the mixed-precision matmuls.
    out16 = jax.block_until_ready(res_conv_block_forward(x, params))
    assert out16.shape == (B, Cout, H, W), out16.shape
    err16 = float(jnp.max(jnp.abs(out16 - ref)))
    assert jnp.allclose(out16, ref, rtol=5e-2, atol=5e-2), "bf16 max abs err = %e" % err16

    print("KERNEL_OK")
</pallas_src>

<mosaic_0001>
module attributes {stable_mosaic.version = 11 : i64} {
  func.func @_res_block_kernel(%arg0: i32, %arg1: memref<1x8x640xf32, #tpu.memory_space<vmem>>, %arg2: memref<1x384xf32, #tpu.memory_space<vmem>>, %arg3: memref<16x72xf32, #tpu.memory_space<vmem>>, %arg4: memref<16x1xf32, #tpu.memory_space<vmem>>, %arg5: memref<8x384xf32, #tpu.memory_space<vmem>>, %arg6: memref<8x384xf32, #tpu.memory_space<vmem>>, %arg7: memref<8x384xf32, #tpu.memory_space<vmem>>, %arg8: memref<8x384xf32, #tpu.memory_space<vmem>>, %arg9: memref<8x72xf32, #tpu.memory_space<vmem>>, %arg10: memref<8x1xf32, #tpu.memory_space<vmem>>, %arg11: memref<8x384xf32, #tpu.memory_space<vmem>>, %arg12: memref<8x384xf32, #tpu.memory_space<vmem>>, %arg13: memref<1x8x384xf32, #tpu.memory_space<vmem>>, %arg14: memref<72x384xf32, #tpu.memory_space<vmem>>, %arg15: memref<72x384xf32, #tpu.memory_space<vmem>>, %arg16: memref<8x640xf32, #tpu.memory_space<vmem>>) attributes {dimension_semantics = [#tpu.dimension_semantics<parallel>], iteration_bounds = array<i64: 2>, scalar_prefetch = 0 : i64, scratch_operands = 3 : i64, tpu.core_type = #tpu.core_type<tc>, window_params = [{transform_indices = @transform_0, window_bounds = array<i64: 1, 8, 640>}, {pipeline_mode = #tpu.pipeline_mode<synchronous>, transform_indices = @transform_1, window_bounds = array<i64: 1, 384>}, {pipeline_mode = #tpu.pipeline_mode<synchronous>, transform_indices = @transform_2, window_bounds = array<i64: 16, 72>}, {pipeline_mode = #tpu.pipeline_mode<synchronous>, transform_indices = @transform_3, window_bounds = array<i64: 16, 1>}, {pipeline_mode = #tpu.pipeline_mode<synchronous>, transform_indices = @transform_4, window_bounds = array<i64: 8, 384>}, {pipeline_mode = #tpu.pipeline_mode<synchronous>, transform_indices = @transform_5, window_bounds = array<i64: 8, 384>}, {pipeline_mode = #tpu.pipeline_mode<synchronous>, transform_indices = @transform_6, window_bounds = array<i64: 8, 384>}, {pipeline_mode = #tpu.pipeline_mode<synchronous>, transform_indices = @transform_7, window_bounds = array<i64: 8, 384>}, {pipeline_mode = #tpu.pipeline_mode<synchronous>, transform_indices = @transform_8, window_bounds = array<i64: 8, 72>}, {pipeline_mode = #tpu.pipeline_mode<synchronous>, transform_indices = @transform_9, window_bounds = array<i64: 8, 1>}, {pipeline_mode = #tpu.pipeline_mode<synchronous>, transform_indices = @transform_10, window_bounds = array<i64: 8, 384>}, {pipeline_mode = #tpu.pipeline_mode<synchronous>, transform_indices = @transform_11, window_bounds = array<i64: 8, 384>}, {transform_indices = @transform_12, window_bounds = array<i64: 1, 8, 384>}]} {
    %c0 = arith.constant 0 : index
    %c0_0 = arith.constant 0 : index
    %0 = vector.load %arg2[%c0, %c0_0] : memref<1x384xf32, #tpu.memory_space<vmem>>, vector<1x384xf32>
    %c0_1 = arith.constant 0 : index
    %c0_2 = arith.constant 0 : index
    %c109 = arith.constant 109 : index
    %1 = vector.load %arg1[%c0_1, %c0_2, %c109] : memref<1x8x640xf32, #tpu.memory_space<vmem>>, vector<1x8x384xf32>
    %2 = vector.shape_cast %1 : vector<1x8x384xf32> to vector<8x384xf32>
    %c0_3 = arith.constant 0 : index
    %c0_4 = arith.constant 0 : index
    %3 = vector.load %arg14[%c0_3, %c0_4] : memref<72x384xf32, #tpu.memory_space<vmem>>, vector<8x384xf32>
    tpu.vector_store %arg14[%c0_3, %c0_4], %2 {strides = array<i32>} : memref<72x384xf32, #tpu.memory_space<vmem>>, vector<8x384xf32>,
    %c0_5 = arith.constant 0 : index
    %c0_6 = arith.constant 0 : index
    %c110 = arith.constant 110 : index
    %4 = vector.load %arg1[%c0_5, %c0_6, %c110] : memref<1x8x640xf32, #tpu.memory_space<vmem>>, vector<1x8x384xf32>
    %5 = vector.shape_cast %4 : vector<1x8x384xf32> to vector<8x384xf32>
    %c8 = arith.constant 8 : index
    %c0_7 = arith.constant 0 : index
    %6 = vector.load %arg14[%c8, %c0_7] : memref<72x384xf32, #tpu.memory_space<vmem>>, vector<8x384xf32>
    tpu.vector_store %arg14[%c8, %c0_7], %5 {strides = array<i32>} : memref<72x384xf32, #tpu.memory_space<vmem>>, vector<8x384xf32>,
    %c0_8 = arith.constant 0 : index
    %c0_9 = arith.constant 0 : index
    %c111 = arith.constant 111 : index
    %7 = vector.load %arg1[%c0_8, %c0_9, %c111] : memref<1x8x640xf32, #tpu.memory_space<vmem>>, vector<1x8x384xf32>
    %8 = vector.shape_cast %7 : vector<1x8x384xf32> to vector<8x384xf32>
    %c16 = arith.constant 16 : index
    %c0_10 = arith.constant 0 : index
    %9 = vector.load %arg14[%c16, %c0_10] : memref<72x384xf32, #tpu.memory_space<vmem>>, vector<8x384xf32>
    tpu.vector_store %arg14[%c16, %c0_10], %8 {strides = array<i32>} : memref<72x384xf32, #tpu.memory_space<vmem>>, vector<8x384xf32>,
    %c0_11 = arith.constant 0 : index
    %c0_12 = arith.constant 0 : index
    %c127 = arith.constant 127 : index
    %10 = vector.load %arg1[%c0_11, %c0_12, %c127] : memref<1x8x640xf32, #tpu.memory_space<vmem>>, vector<1x8x384xf32>
    %11 = vector.shape_cast %10 : vector<1x8x384xf32> to vector<8x384xf32>
    %c24 = arith.constant 24 : index
    %c0_13 = arith.constant 0 : index
    %12 = vector.load %arg14[%c24, %c0_13] : memref<72x384xf32, #tpu.memory_space<vmem>>, vector<8x384xf32>
    tpu.vector_store %arg14[%c24, %c0_13], %11 {strides = array<i32>} : memref<72x384xf32, #tpu.memory_space<vmem>>, vector<8x384xf32>,
    %c0_14 = arith.constant 0 : index
    %c0_15 = arith.constant 0 : index
    %c128 = arith.constant 128 : index
    %13 = vector.load %arg1[%c0_14, %c0_15, %c128] : memref<1x8x640xf32, #tpu.memory_space<vmem>>, vector<1x8x384xf32>
    %14 = vector.shape_cast %13 : vector<1x8x384xf32> to vector<8x384xf32>
    %c32 = arith.constant 32 : index
    %c0_16 = arith.constant 0 : index
    %15 = vector.load %arg14[%c32, %c0_16] : memref<72x384xf32, #tpu.memory_space<vmem>>, vector<8x384xf32>
    tpu.vector_store %arg14[%c32, %c0_16], %14 {strides = array<i32>} : memref<72x384xf32, #tpu.memory_space<vmem>>, vector<8x384xf32>,
    %c0_17 = arith.constant 0 : index
    %c0_18 = arith.constant 0 : index
    %c129 = arith.constant 129 : index
    %16 = vector.load %arg1[%c0_17, %c0_18, %c129] : memref<1x8x640xf32, #tpu.memory_space<vmem>>, vector<1x8x384xf32>
    %17 = vector.shape_cast %16 : vector<1x8x384xf32> to vector<8x384xf32>
    %c40 = arith.constant 40 : index
    %c0_19 = arith.constant 0 : index
    %18 = vector.load %arg14[%c40, %c0_19] : memref<72x384xf32, #tpu.memory_space<vmem>>, vector<8x384xf32>
    tpu.vector_store %arg14[%c40, %c0_19], %17 {strides = array<i32>} : memref<72x384xf32, #tpu.memory_space<vmem>>, vector<8x384xf32>,
    %c0_20 = arith.constant 0 : index
    %c0_21 = arith.constant 0 : index
    %c145 = arith.constant 145 : index
    %19 = vector.load %arg1[%c0_20, %c0_21, %c145] : memref<1x8x640xf32, #tpu.memory_space<vmem>>, vector<1x8x384xf32>
    %20 = vector.shape_cast %19 : vector<1x8x384xf32> to vector<8x384xf32>
    %c48 = arith.constant 48 : index
    %c0_22 = arith.constant 0 : index
    %21 = vector.load %arg14[%c48, %c0_22] : memref<72x384xf32, #tpu.memory_space<vmem>>, vector<8x384xf32>
    tpu.vector_store %arg14[%c48, %c0_22], %20 {strides = array<i32>} : memref<72x384xf32, #tpu.memory_space<vmem>>, vector<8x384xf32>,
    %c0_23 = arith.constant 0 : index
    %c0_24 = arith.constant 0 : index
    %c146 = arith.constant 146 : index
    %22 = vector.load %arg1[%c0_23, %c0_24, %c146] : memref<1x8x640xf32, #tpu.memory_space<vmem>>, vector<1x8x384xf32>
    %23 = vector.shape_cast %22 : vector<1x8x384xf32> to vector<8x384xf32>
    %c56 = arith.constant 56 : index
    %c0_25 = arith.constant 0 : index
    %24 = vector.load %arg14[%c56, %c0_25] : memref<72x384xf32, #tpu.memory_space<vmem>>, vector<8x384xf32>
    tpu.vector_store %arg14[%c56, %c0_25], %23 {strides = array<i32>} : memref<72x384xf32, #tpu.memory_space<vmem>>, vector<8x384xf32>,
    %c0_26 = arith.constant 0 : index
    %c0_27 = arith.constant 0 : index
    %c147 = arith.constant 147 : index
    %25 = vector.load %arg1[%c0_26, %c0_27, %c147] : memref<1x8x640xf32, #tpu.memory_space<vmem>>, vector<1x8x384xf32>
    %26 = vector.shape_cast %25 : vector<1x8x384xf32> to vector<8x384xf32>
    %c64 = arith.constant 64 : index
    %c0_28 = arith.constant 0 : index
    %27 = vector.load %arg14[%c64, %c0_28] : memref<72x384xf32, #tpu.memory_space<vmem>>, vector<8x384xf32>
    tpu.vector_store %arg14[%c64, %c0_28], %26 {strides = array<i32>} : memref<72x384xf32, #tpu.memory_space<vmem>>, vector<8x384xf32>,
    %c0_29 = arith.constant 0 : index
    %c0_30 = arith.constant 0 : index
    %28 = vector.load %arg3[%c0_29, %c0_30] : memref<16x72xf32, #tpu.memory_space<vmem>>, vector<16x72xf32>
    %c0_31 = arith.constant 0 : index
    %c0_32 = arith.constant 0 : index
    %29 = vector.load %arg14[%c0_31, %c0_32] : memref<72x384xf32, #tpu.memory_space<vmem>>, vector<72x384xf32>
    %cst = arith.constant dense<0.000000e+00> : vector<16x384xf32>
    %30 = tpu.matmul %28, %29, %cst {dimension_numbers = #tpu.dot_dimension_numbers<[1], [0], [0], [1], [0, 0, 1, 1], [], []>} : vector<16x72xf32>, vector<72x384xf32>, vector<16x384xf32> -> vector<16x384xf32>
    %c0_33 = arith.constant 0 : index
    %c0_34 = arith.constant 0 : index
    %31 = vector.load %arg4[%c0_33, %c0_34] : memref<16x1xf32, #tpu.memory_space<vmem>>, vector<16x1xf32>
    %32 = vector.broadcast %31 : vector<16x1xf32> to vector<16x384xf32>
    %33 = arith.addf %30, %32 : vector<16x384xf32>
    %34 = vector.extract_strided_slice %33 {offsets = [8, 0], sizes = [8, 384], strides = [1, 1]} : vector<16x384xf32> to vector<8x384xf32>
    %35 = vector.broadcast %0 : vector<1x384xf32> to vector<8x384xf32>
    %36 = arith.mulf %34, %35 : vector<8x384xf32>
    %37 = vector.shape_cast %36 : vector<8x384xf32> to vector<1x8x384xf32>
    %cst_35 = arith.constant dense<0.000000e+00> : vector<1xf32>
    %38 = vector.multi_reduction <add>, %37, %cst_35 [1, 2] : vector<1x8x384xf32> to vector<1xf32>
    %39 = vector.shape_cast %38 : vector<1xf32> to vector<1x1x1xf32>
    %40 = vector.extract %39[0, 0, 0] : f32 from vector<1x1x1xf32>
    %cst_36 = arith.constant 4.8828125E-4 : f32
    %41 = arith.mulf %40, %cst_36 : f32
    %42 = arith.mulf %36, %36 : vector<8x384xf32>
    %43 = vector.shape_cast %42 : vector<8x384xf32> to vector<1x8x384xf32>
    %cst_37 = arith.constant dense<0.000000e+00> : vector<1xf32>
    %44 = vector.multi_reduction <add>, %43, %cst_37 [1, 2] : vector<1x8x384xf32> to vector<1xf32>
    %45 = vector.shape_cast %44 : vector<1xf32> to vector<1x1x1xf32>
    %46 = vector.extract %45[0, 0, 0] : f32 from vector<1x1x1xf32>
    %cst_38 = arith.constant 4.8828125E-4 : f32
    %47 = arith.mulf %46, %cst_38 : f32
    %48 = arith.mulf %41, %41 : f32
    %49 = arith.subf %47, %48 : f32
    %cst_39 = arith.constant 0.000000e+00 : f32
    %50 = arith.maximumf %49, %cst_39 : f32
    %51 = vector.broadcast %41 : f32 to vector<8x384xf32>
    %52 = arith.subf %36, %51 : vector<8x384xf32>
    %cst_40 = arith.constant 9.99999974E-6 : f32
    %53 = arith.addf %50, %cst_40 : f32
    %54 = math.rsqrt %53 : f32
    %55 = vector.broadcast %54 : f32 to vector<8x384xf32>
    %56 = arith.mulf %52, %55 : vector<8x384xf32>
    %c0_41 = arith.constant 0 : index
    %c0_42 = arith.constant 0 : index
    %57 = vector.load %arg7[%c0_41, %c0_42] : memref<8x384xf32, #tpu.memory_space<vmem>>, vector<8x384xf32>
    %58 = arith.mulf %56, %57 : vector<8x384xf32>
    %c0_43 = arith.constant 0 : index
    %c0_44 = arith.constant 0 : index
    %59 = vector.load %arg8[%c0_43, %c0_44] : memref<8x384xf32, #tpu.memory_space<vmem>>, vector<8x384xf32>
    %60 = arith.addf %58, %59 : vector<8x384xf32>
    %61 = vector.extract_strided_slice %33 {offsets = [0, 0], sizes = [8, 384], strides = [1, 1]} : vector<16x384xf32> to vector<8x384xf32>
    %62 = vector.broadcast %0 : vector<1x384xf32> to vector<8x384xf32>
    %63 = arith.mulf %61, %62 : vector<8x384xf32>
    %64 = vector.shape_cast %63 : vector<8x384xf32> to vector<1x8x384xf32>
    %cst_45 = arith.constant dense<0.000000e+00> : vector<1xf32>
    %65 = vector.multi_reduction <add>, %64, %cst_45 [1, 2] : vector<1x8x384xf32> to vector<1xf32>
    %66 = vector.shape_cast %65 : vector<1xf32> to vector<1x1x1xf32>
    %67 = vector.extract %66[0, 0, 0] : f32 from vector<1x1x1xf32>
    %cst_46 = arith.constant 4.8828125E-4 : f32
    %68 = arith.mulf %67, %cst_46 : f32
    %69 = arith.mulf %63, %63 : vector<8x384xf32>
    %70 = vector.shape_cast %69 : vector<8x384xf32> to vector<1x8x384xf32>
    %cst_47 = arith.constant dense<0.000000e+00> : vector<1xf32>
    %71 = vector.multi_reduction <add>, %70, %cst_47 [1, 2] : vector<1x8x384xf32> to vector<1xf32>
    %72 = vector.shape_cast %71 : vector<1xf32> to vector<1x1x1xf32>
    %73 = vector.extract %72[0, 0, 0] : f32 from vector<1x1x1xf32>
    %cst_48 = arith.constant 4.8828125E-4 : f32
    %74 = arith.mulf %73, %cst_48 : f32
    %75 = arith.mulf %68, %68 : f32
    %76 = arith.subf %74, %75 : f32
    %cst_49 = arith.constant 0.000000e+00 : f32
    %77 = arith.maximumf %76, %cst_49 : f32
    %78 = vector.broadcast %68 : f32 to vector<8x384xf32>
    %79 = arith.subf %63, %78 : vector<8x384xf32>
    %cst_50 = arith.constant 9.99999974E-6 : f32
    %80 = arith.addf %77, %cst_50 : f32
    %81 = math.rsqrt %80 : f32
    %82 = vector.broadcast %81 : f32 to vector<8x384xf32>
    %83 = arith.mulf %79, %82 : vector<8x384xf32>
    %c0_51 = arith.constant 0 : index
    %c0_52 = arith.constant 0 : index
    %84 = vector.load %arg5[%c0_51, %c0_52] : memref<8x384xf32, #tpu.memory_space<vmem>>, vector<8x384xf32>
    %85 = arith.mulf %83, %84 : vector<8x384xf32>
    %c0_53 = arith.constant 0 : index
    %c0_54 = arith.constant 0 : index
    %86 = vector.load %arg6[%c0_53, %c0_54] : memref<8x384xf32, #tpu.memory_space<vmem>>, vector<8x384xf32>
    %87 = arith.addf %85, %86 : vector<8x384xf32>
    %cst_55 = arith.constant 0.000000e+00 : f32
    %88 = vector.broadcast %cst_55 : f32 to vector<8x384xf32>
    %89 = arith.maximumf %87, %88 : vector<8x384xf32>
    %cst_56 = arith.constant 0.000000e+00 : f32
    %90 = vector.broadcast %cst_56 : f32 to vector<8x128xf32>
    %c0_57 = arith.constant 0 : index
    %c0_58 = arith.constant 0 : index
    %91 = vector.load %arg16[%c0_57, %c0_58] : memref<8x640xf32, #tpu.memory_space<vmem>>, vector<8x128xf32>
    tpu.vector_store %arg16[%c0_57, %c0_58], %90 {strides = array<i32>} : memref<8x640xf32, #tpu.memory_space<vmem>>, vector<8x128xf32>,
    %c0_59 = arith.constant 0 : index
    %c512 = arith.constant 512 : index
    %92 = vector.load %arg16[%c0_59, %c512] : memref<8x640xf32, #tpu.memory_space<vmem>>, vector<8x128xf32>
    tpu.vector_store %arg16[%c0_59, %c512], %90 {strides = array<i32>} : memref<8x640xf32, #tpu.memory_space<vmem>>, vector<8x128xf32>,
    %c0_60 = arith.constant 0 : index
    %c128_61 = arith.constant 128 : index
    %93 = vector.load %arg16[%c0_60, %c128_61] : memref<8x640xf32, #tpu.memory_space<vmem>>, vector<8x384xf32>
    tpu.vector_store %arg16[%c0_60, %c128_61], %89 {strides = array<i32>} : memref<8x640xf32, #tpu.memory_space<vmem>>, vector<8x384xf32>,
    %c0_62 = arith.constant 0 : index
    %c109_63 = arith.constant 109 : index
    %94 = vector.load %arg16[%c0_62, %c109_63] : memref<8x640xf32, #tpu.memory_space<vmem>>, vector<8x384xf32>
    %c0_64 = arith.constant 0 : index
    %c0_65 = arith.constant 0 : index
    %95 = vector.load %arg15[%c0_64, %c0_65] : memref<72x384xf32, #tpu.memory_space<vmem>>, vector<8x384xf32>
    tpu.vector_store %arg15[%c0_64, %c0_65], %94 {strides = array<i32>} : memref<72x384xf32, #tpu.memory_space<vmem>>, vector<8x384xf32>,
    %c0_66 = arith.constant 0 : index
    %c110_67 = arith.constant 110 : index
    %96 = vector.load %arg16[%c0_66, %c110_67] : memref<8x640xf32, #tpu.memory_space<vmem>>, vector<8x384xf32>
    %c8_68 = arith.constant 8 : index
    %c0_69 = arith.constant 0 : index
    %97 = vector.load %arg15[%c8_68, %c0_69] : memref<72x384xf32, #tpu.memory_space<vmem>>, vector<8x384xf32>
    tpu.vector_store %arg15[%c8_68, %c0_69], %96 {strides = array<i32>} : memref<72x384xf32, #tpu.memory_space<vmem>>, vector<8x384xf32>,
    %c0_70 = arith.constant 0 : index
    %c111_71 = arith.constant 111 : index
    %98 = vector.load %arg16[%c0_70, %c111_71] : memref<8x640xf32, #tpu.memory_space<vmem>>, vector<8x384xf32>
    %c16_72 = arith.constant 16 : index
    %c0_73 = arith.constant 0 : index
    %99 = vector.load %arg15[%c16_72, %c0_73] : memref<72x384xf32, #tpu.memory_space<vmem>>, vector<8x384xf32>
    tpu.vector_store %arg15[%c16_72, %c0_73], %98 {strides = array<i32>} : memref<72x384xf32, #tpu.memory_space<vmem>>, vector<8x384xf32>,
    %c0_74 = arith.constant 0 : index
    %c127_75 = arith.constant 127 : index
    %100 = vector.load %arg16[%c0_74, %c127_75] : memref<8x640xf32, #tpu.memory_space<vmem>>, vector<8x384xf32>
    %c24_76 = arith.constant 24 : index
    %c0_77 = arith.constant 0 : index
    %101 = vector.load %arg15[%c24_76, %c0_77] : memref<72x384xf32, #tpu.memory_space<vmem>>, vector<8x384xf32>
    tpu.vector_store %arg15[%c24_76, %c0_77], %100 {strides = array<i32>} : memref<72x384xf32, #tpu.memory_space<vmem>>, vector<8x384xf32>,
    %c0_78 = arith.constant 0 : index
    %c128_79 = arith.constant 128 : index
    %102 = vector.load %arg16[%c0_78, %c128_79] : memref<8x640xf32, #tpu.memory_space<vmem>>, vector<8x384xf32>
    %c32_80 = arith.constant 32 : index
    %c0_81 = arith.constant 0 : index
    %103 = vector.load %arg15[%c32_80, %c0_81] : memref<72x384xf32, #tpu.memory_space<vmem>>, vector<8x384xf32>
    tpu.vector_store %arg15[%c32_80, %c0_81], %102 {strides = array<i32>} : memref<72x384xf32, #tpu.memory_space<vmem>>, vector<8x384xf32>,
    %c0_82 = arith.constant 0 : index
    %c129_83 = arith.constant 129 : index
    %104 = vector.load %arg16[%c0_82, %c129_83] : memref<8x640xf32, #tpu.memory_space<vmem>>, vector<8x384xf32>
    %c40_84 = arith.constant 40 : index
    %c0_85 = arith.constant 0 : index
    %105 = vector.load %arg15[%c40_84, %c0_85] : memref<72x384xf32, #tpu.memory_space<vmem>>, vector<8x384xf32>
    tpu.vector_store %arg15[%c40_84, %c0_85], %104 {strides = array<i32>} : memref<72x384xf32, #tpu.memory_space<vmem>>, vector<8x384xf32>,
    %c0_86 = arith.constant 0 : index
    %c145_87 = arith.constant 145 : index
    %106 = vector.load %arg16[%c0_86, %c145_87] : memref<8x640xf32, #tpu.memory_space<vmem>>, vector<8x384xf32>
    %c48_88 = arith.constant 48 : index
    %c0_89 = arith.constant 0 : index
    %107 = vector.load %arg15[%c48_88, %c0_89] : memref<72x384xf32, #tpu.memory_space<vmem>>, vector<8x384xf32>
    tpu.vector_store %arg15[%c48_88, %c0_89], %106 {strides = array<i32>} : memref<72x384xf32, #tpu.memory_space<vmem>>, vector<8x384xf32>,
    %c0_90 = arith.constant 0 : index
    %c146_91 = arith.constant 146 : index
    %108 = vector.load %arg16[%c0_90, %c146_91] : memref<8x640xf32, #tpu.memory_space<vmem>>, vector<8x384xf32>
    %c56_92 = arith.constant 56 : index
    %c0_93 = arith.constant 0 : index
    %109 = vector.load %arg15[%c56_92, %c0_93] : memref<72x384xf32, #tpu.memory_space<vmem>>, vector<8x384xf32>
    tpu.vector_store %arg15[%c56_92, %c0_93], %108 {strides = array<i32>} : memref<72x384xf32, #tpu.memory_space<vmem>>, vector<8x384xf32>,
    %c0_94 = arith.constant 0 : index
    %c147_95 = arith.constant 147 : index
    %110 = vector.load %arg16[%c0_94, %c147_95] : memref<8x640xf32, #tpu.memory_space<vmem>>, vector<8x384xf32>
    %c64_96 = arith.constant 64 : index
    %c0_97 = arith.constant 0 : index
    %111 = vector.load %arg15[%c64_96, %c0_97] : memref<72x384xf32, #tpu.memory_space<vmem>>, vector<8x384xf32>
    tpu.vector_store %arg15[%c64_96, %c0_97], %110 {strides = array<i32>} : memref<72x384xf32, #tpu.memory_space<vmem>>, vector<8x384xf32>,
    %c0_98 = arith.constant 0 : index
    %c0_99 = arith.constant 0 : index
    %112 = vector.load %arg9[%c0_98, %c0_99] : memref<8x72xf32, #tpu.memory_space<vmem>>, vector<8x72xf32>
    %c0_100 = arith.constant 0 : index
    %c0_101 = arith.constant 0 : index
    %113 = vector.load %arg15[%c0_100, %c0_101] : memref<72x384xf32, #tpu.memory_space<vmem>>, vector<72x384xf32>
    %cst_102 = arith.constant dense<0.000000e+00> : vector<8x384xf32>
    %114 = tpu.matmul %112, %113, %cst_102 {dimension_numbers = #tpu.dot_dimension_numbers<[1], [0], [0], [1], [0, 0, 1, 1], [], []>} : vector<8x72xf32>, vector<72x384xf32>, vector<8x384xf32> -> vector<8x384xf32>
    %c0_103 = arith.constant 0 : index
    %c0_104 = arith.constant 0 : index
    %115 = vector.load %arg10[%c0_103, %c0_104] : memref<8x1xf32, #tpu.memory_space<vmem>>, vector<8x1xf32>
    %116 = vector.broadcast %115 : vector<8x1xf32> to vector<8x384xf32>
    %117 = arith.addf %114, %116 : vector<8x384xf32>
    %118 = vector.broadcast %0 : vector<1x384xf32> to vector<8x384xf32>
    %119 = arith.mulf %117, %118 : vector<8x384xf32>
    %120 = vector.shape_cast %119 : vector<8x384xf32> to vector<1x8x384xf32>
    %cst_105 = arith.constant dense<0.000000e+00> : vector<1xf32>
    %121 = vector.multi_reduction <add>, %120, %cst_105 [1, 2] : vector<1x8x384xf32> to vector<1xf32>
    %122 = vector.shape_cast %121 : vector<1xf32> to vector<1x1x1xf32>
    %123 = vector.extract %122[0, 0, 0] : f32 from vector<1x1x1xf32>
    %cst_106 = arith.constant 4.8828125E-4 : f32
    %124 = arith.mulf %123, %cst_106 : f32
    %125 = arith.mulf %119, %119 : vector<8x384xf32>
    %126 = vector.shape_cast %125 : vector<8x384xf32> to vector<1x8x384xf32>
    %cst_107 = arith.constant dense<0.000000e+00> : vector<1xf32>
    %127 = vector.multi_reduction <add>, %126, %cst_107 [1, 2] : vector<1x8x384xf32> to vector<1xf32>
    %128 = vector.shape_cast %127 : vector<1xf32> to vector<1x1x1xf32>
    %129 = vector.extract %128[0, 0, 0] : f32 from vector<1x1x1xf32>
    %cst_108 = arith.constant 4.8828125E-4 : f32
    %130 = arith.mulf %129, %cst_108 : f32
    %131 = arith.mulf %124, %124 : f32
    %132 = arith.subf %130, %131 : f32
    %cst_109 = arith.constant 0.000000e+00 : f32
    %133 = arith.maximumf %132, %cst_109 : f32
    %134 = vector.broadcast %124 : f32 to vector<8x384xf32>
    %135 = arith.subf %119, %134 : vector<8x384xf32>
    %cst_110 = arith.constant 9.99999974E-6 : f32
    %136 = arith.addf %133, %cst_110 : f32
    %137 = math.rsqrt %136 : f32
    %138 = vector.broadcast %137 : f32 to vector<8x384xf32>
    %139 = arith.mulf %135, %138 : vector<8x384xf32>
    %c0_111 = arith.constant 0 : index
    %c0_112 = arith.constant 0 : index
    %140 = vector.load %arg11[%c0_111, %c0_112] : memref<8x384xf32, #tpu.memory_space<vmem>>, vector<8x384xf32>
    %141 = arith.mulf %139, %140 : vector<8x384xf32>
    %c0_113 = arith.constant 0 : index
    %c0_114 = arith.constant 0 : index
    %142 = vector.load %arg12[%c0_113, %c0_114] : memref<8x384xf32, #tpu.memory_space<vmem>>, vector<8x384xf32>
    %143 = arith.addf %141, %142 : vector<8x384xf32>
    %cst_115 = arith.constant 0.000000e+00 : f32
    %144 = vector.broadcast %cst_115 : f32 to vector<8x384xf32>
    %145 = arith.maximumf %143, %144 : vector<8x384xf32>
    %146 = arith.addf %145, %60 : vector<8x384xf32>
    %c0_116 = arith.constant 0 : index
    %c0_117 = arith.constant 0 : index
    %c0_118 = arith.constant 0 : index
    %147 = vector.load %arg13[%c0_116, %c0_117, %c0_118] : memref<1x8x384xf32, #tpu.memory_space<vmem>>, vector<1x8x384xf32>
    %148 = vector.shape_cast %147 : vector<1x8x384xf32> to vector<8x384xf32>
    %149 = vector.shape_cast %146 : vector<8x384xf32> to vector<1x8x384xf32>
    tpu.vector_store %arg13[%c0_116, %c0_117, %c0_118], %149 {strides = array<i32>} : memref<1x8x384xf32, #tpu.memory_space<vmem>>, vector<1x8x384xf32>,
    return
  }
  func.func @transform_0(%arg0: i32) -> (i32, i32, i32) {
    %c0_i32 = arith.constant 0 : i32
    %c0_i32_0 = arith.constant 0 : i32
    %c0_i32_1 = arith.constant 0 : i32
    return %arg0, %c0_i32, %c0_i32_0 : i32, i32, i32
  }
  func.func @transform_1(%arg0: i32) -> (i32, i32) {
    %c0_i32 = arith.constant 0 : i32
    %c0_i32_0 = arith.constant 0 : i32
    %c0_i32_1 = arith.constant 0 : i32
    return %c0_i32, %c0_i32_0 : i32, i32
  }
  func.func @transform_2(%arg0: i32) -> (i32, i32) {
    %c0_i32 = arith.constant 0 : i32
    %c0_i32_0 = arith.constant 0 : i32
    %c0_i32_1 = arith.constant 0 : i32
    return %c0_i32, %c0_i32_0 : i32, i32
  }
  func.func @transform_3(%arg0: i32) -> (i32, i32) {
    %c0_i32 = arith.constant 0 : i32
    %c0_i32_0 = arith.constant 0 : i32
    %c0_i32_1 = arith.constant 0 : i32
    return %c0_i32, %c0_i32_0 : i32, i32
  }
  func.func @transform_4(%arg0: i32) -> (i32, i32) {
    %c0_i32 = arith.constant 0 : i32
    %c0_i32_0 = arith.constant 0 : i32
    %c0_i32_1 = arith.constant 0 : i32
    return %c0_i32, %c0_i32_0 : i32, i32
  }
  func.func @transform_5(%arg0: i32) -> (i32, i32) {
    %c0_i32 = arith.constant 0 : i32
    %c0_i32_0 = arith.constant 0 : i32
    %c0_i32_1 = arith.constant 0 : i32
    return %c0_i32, %c0_i32_0 : i32, i32
  }
  func.func @transform_6(%arg0: i32) -> (i32, i32) {
    %c0_i32 = arith.constant 0 : i32
    %c0_i32_0 = arith.constant 0 : i32
    %c0_i32_1 = arith.constant 0 : i32
    return %c0_i32, %c0_i32_0 : i32, i32
  }
  func.func @transform_7(%arg0: i32) -> (i32, i32) {
    %c0_i32 = arith.constant 0 : i32
    %c0_i32_0 = arith.constant 0 : i32
    %c0_i32_1 = arith.constant 0 : i32
    return %c0_i32, %c0_i32_0 : i32, i32
  }
  func.func @transform_8(%arg0: i32) -> (i32, i32) {
    %c0_i32 = arith.constant 0 : i32
    %c0_i32_0 = arith.constant 0 : i32
    %c0_i32_1 = arith.constant 0 : i32
    return %c0_i32, %c0_i32_0 : i32, i32
  }
  func.func @transform_9(%arg0: i32) -> (i32, i32) {
    %c0_i32 = arith.constant 0 : i32
    %c0_i32_0 = arith.constant 0 : i32
    %c0_i32_1 = arith.constant 0 : i32
    return %c0_i32, %c0_i32_0 : i32, i32
  }
  func.func @transform_10(%arg0: i32) -> (i32, i32) {
    %c0_i32 = arith.constant 0 : i32
    %c0_i32_0 = arith.constant 0 : i32
    %c0_i32_1 = arith.constant 0 : i32
    return %c0_i32, %c0_i32_0 : i32, i32
  }
  func.func @transform_11(%arg0: i32) -> (i32, i32) {
    %c0_i32 = arith.constant 0 : i32
    %c0_i32_0 = arith.constant 0 : i32
    %c0_i32_1 = arith.constant 0 : i32
    return %c0_i32, %c0_i32_0 : i32, i32
  }
  func.func @transform_12(%arg0: i32) -> (i32, i32, i32) {
    %c0_i32 = arith.constant 0 : i32
    %c0_i32_0 = arith.constant 0 : i32
    %c0_i32_1 = arith.constant 0 : i32
    return %arg0, %c0_i32, %c0_i32_0 : i32, i32, i32
  }
}

</mosaic_0001>

<bundles_post_ra>
// kernel: res_conv_block_forward.1
= control target key start
LH: loop header
LB: loop body
LE: loop exit
PB: predicated region body
PF: predicated region fallthrough
CT: control target
= control target key end

     0   :  { %s1875_s21 = smov 0   ;;  %s2180_s0 = inlined_call_operand.vmem [shape: f32[2,8,640], index: 0, kind: input, shape index: {}]   ;;  %s2181_s1 = inlined_call_operand.vmem [shape: f32[1,384], index: 1, kind: input, shape index: {}]   ;;  %s2182_s2 = inlined_call_operand.vmem [shape: f32[16,72], index: 2, kind: input, shape index: {}]   ;;  %s2183_s3 = inlined_call_operand.vmem [shape: f32[16,1], index: 3, kind: input, shape index: {}]   ;;  %s2184_s4 = inlined_call_operand.vmem [shape: f32[8,384], index: 4, kind: input, shape index: {}]   ;;  %s2185_s5 = inlined_call_operand.vmem [shape: f32[8,384], index: 5, kind: input, shape index: {}]   ;;  %s2186_s6 = inlined_call_operand.vmem [shape: f32[8,384], index: 6, kind: input, shape index: {}]   ;;  %s2187_s7 = inlined_call_operand.vmem [shape: f32[8,384], index: 7, kind: input, shape index: {}]   ;;  %s2188_s8 = inlined_call_operand.vmem [shape: f32[8,72], index: 8, kind: input, shape index: {}]   ;;  %s2189_s9 = inlined_call_operand.vmem [shape: f32[8,1], index: 9, kind: input, shape index: {}]   ;;  %s2190_s10 = inlined_call_operand.vmem [shape: f32[8,384], index: 10, kind: input, shape index: {}]   ;;  %s2191_s11 = inlined_call_operand.vmem [shape: f32[8,384], index: 11, kind: input, shape index: {}]   ;;  %s2192_s12 = inlined_call_operand.vmem [shape: f32[2,8,384], index: 12, kind: output, shape index: {}]  }
   0x1 LB: > { %s1472_s22 = sadd.s32 4294967295, %s1795_s21   ;;  %p1476_p0 = scmp.ge.s32.totalorder %s1795_s21, 1  ;;  %s1795_s21 = sphi %s1875_s21, %s22_s21  }
   0x2   : > { %p362_p1 = scmp.lt.s32.totalorder %s1795_s21, 3 }
   0x4   : > { %p363_p2 = pnand %p1476_p0, %p362_p1 }
   0x5   : > { %p404_p3 = scmp.lt.s32.totalorder (!%p363_p2), %s1472_s22, 1  ;;  %s1797_s27 = smov (!%p363_p2), 19   ;;  %v1804_v9 = vmov (!%p363_p2), 0.0   ;;  %v1921_v10 = vld [vmem:[%s2182_s2] sm:$0xff] (!%p363_p2)  ;;  %vm670_vm0 = vcmask (!%p363_p2), 588800   ;;  %v1806_v11 = vmov (!%p363_p2), 0  }
   0x6   : > { %366 = sbr.rel (%p363_p2) target bundleno = 1416 (0x588), region = 68  ;;  %s1798_s28 = smov (!%p363_p2), 18   ;;  %741 = vmatprep.mubr.f32.mxu0 (!%p363_p2), %v1804_v9  ;;  %1526 = vmatprep.mubr.msk.f32.mxu1 (!%p363_p2), %vm670_vm0, %v1921_v10  ;;  %v659_v12 = vld [vmem:[%s2183_s3 + $0x8] sm:$0xff] (!%p363_p2)  ;;  %v658_v13 = vld [vmem:[%s2183_s3] sm:$0xff] (!%p363_p2)  ;;  %vm431_vm1 = vcmask (!%p363_p2), 154624   ;;  %vm457_vm2 = vcmask (!%p363_p2), 146432  }
   0x7   : > { %s1799_s29 = smov (!%p363_p2), 17   ;;  %s1800_s30 = smov (!%p363_p2), 1   ;;  %1712 = vset.pattern.permute.xlu1 (!%p363_p2), %v1806_v11  ;;  %1711 = vset.pattern.permute.xlu0 (!%p363_p2), %v1806_v11  ;;  %vm483_vm3 = vcmask (!%p363_p2), 138240   ;;  %vm509_vm4 = vcmask (!%p363_p2), 7168   ;;  %vm541_vm5 = vcmask (!%p363_p2), 1039360   ;;  %vm567_vm6 = vcmask (!%p363_p2), 908288  }
   0x8   : > { %s1801_s13 = smov (!%p363_p2), 127   ;;  %s1802_s14 = smov (!%p363_p2), 111   ;;  %vm593_vm7 = vcmask (!%p363_p2), 900096   ;;  %vm619_vm8 = vcmask (!%p363_p2), 891904   ;;  %vm1809_vm9 = vmmov (!%p363_p2), 0  }
   0x9   : > { %s2195_s15 = smov (!%p363_p2), 110   ;;  %s2193_s18 = smov (!%p363_p2), 109  }
   0xa   : > { %s2197_s16 = smov (!%p363_p2), 0.0  }
   0xd   : > { %s2202_s22 = smov (!%p404_p3, %s1472_s22), 1 }
   0xe   : > { %s1610_s23 = smul.u32 40, %s2202_s22 }
  0x10   : > { %s408_s26 = scalar_lea.vmem %s2180_s0, %s1610_s23 }
  0x11   : > { %v1889_v0 = vld [vmem:[%s408_s26 + $0x8] sm:$0xff]  ;;  %v1891_v1 = vld [vmem:[%s408_s26 + $0x10] sm:$0xff]  ;;  %v415_v2 = vld [vmem:[%s408_s26] sm:$0xff] }
  0x12   : > { %v1651_v3 = vpack.i.bf16 %v1891_v1, %v1889_v0  ;;  %v1895_v4 = vld [vmem:[%s408_s26 + $0x18] sm:$0xff]  ;;  %v528_v6 = vld [vmem:[%s408_s26 + $0x20] sm:$0xff] }
  0x13   : > { %v1661_v5 = vpack.i.bf16 %v1895_v4, %v415_v2  ;;  %v1691_v7 = vpack.i.bf16 %v1895_v4, %v1891_v1  ;;  %v1696_v8 = vpack.i.bf16 %v528_v6, %v1889_v0 }
  0x14   : > { %1652 = vrot.lane.b32.xlu0 %v1651_v3, %s1797_s27 }
  0x15   : > { %1662 = vrot.lane.b32.xlu1 %v1661_v5, %s1797_s27 }
  0x18   : > { %1657 = vrot.lane.b32.xlu0 %v1651_v3, %s1798_s28 }
  0x19   : > { %1667 = vrot.lane.b32.xlu1 %v1661_v5, %s1798_s28 }
  0x1c   : > { %1672 = vrot.lane.b32.xlu0 %v1651_v3, %s1799_s29 }
  0x1d   : > { %1677 = vrot.lane.b32.xlu1 %v1651_v3, %s1800_s30 }
  0x20   : > { %1682 = vrot.lane.b32.xlu0 %v1661_v5, %s1799_s29 }
  0x21   : > { %1687 = vrot.lane.b32.xlu1 %v1661_v5, %s1800_s30 }
  0x24   : > { %1692 = vrot.lane.b32.xlu0 %v1691_v7, %s1801_s13 }
  0x25   : > { %1697 = vrot.lane.b32.xlu1 %v1696_v8, %s1801_s13 }
  0x28   : > { %1702 = vrot.lane.b32.xlu0 %v1691_v7, %s1802_s14 }
  0x29   : > { %1707 = vrot.lane.b32.xlu1 %v1691_v7, %s2195_s15 }
  0x2c   : > { %559 = vrot.lane.b32.xlu0 %v1889_v0, %s1802_s14 }
  0x2d   : > { %585 = vrot.lane.b32.xlu1 %v1889_v0, %s2195_s15 }
  0x30   : > { %613 = vrot.lane.b32.xlu0 %v1891_v1, %s2193_s18 }
  0x31   : > { %615 = vrot.lane.b32.xlu1 %v1895_v4, %s2193_s18 }
  0x34   : > { %565 = vrot.lane.b32.xlu0 %v528_v6, %s1802_s14 }
  0x35   : > { %591 = vrot.lane.b32.xlu1 %v528_v6, %s2195_s15 }
  0x38   : > { %611 = vrot.lane.b32.xlu0 %v1889_v0, %s2193_s18 }
  0x39   : > { %617 = vrot.lane.b32.xlu1 %v528_v6, %s2193_s18 }
  0x3c   : > { %667 = vperm.xlu0 %1711, %v659_v12  }
  0x3d   : > { %662 = vperm.xlu1 %1712, %v658_v13  }
  0x86   : > { %v1653_v14 = vpop.permute.xlu0 %1652 }
  0x87   : > { %v1663_v15 = vpop.permute.xlu1 %1662  ;;  %v1655_v16 = vunpack.i.h.bf16 %v1653_v14  ;;  %v1654_v17 = vunpack.i.l.bf16 %v1653_v14 }
  0x88   : > { %v1665_v18 = vunpack.i.h.bf16 %v1663_v15  ;;  %v1664_v19 = vunpack.i.l.bf16 %v1663_v15 }
  0x89   : > { %v433_v26 = vsel %vm431_vm1, %v1654_v17, %v1655_v16 }
  0x8a   : > { %v1658_v20 = vpop.permute.xlu0 %1657  ;;  %v434_v28 = vsel %vm431_vm1, %v1655_v16, %v1665_v18  ;;  %v432_v32 = vsel %vm431_vm1, %v1664_v19, %v1654_v17 }
  0x8b   : > { %v1660_v21 = vunpack.i.h.bf16 %v1658_v20  ;;  %v1659_v22 = vunpack.i.l.bf16 %v1658_v20  ;;  %v1668_v23 = vpop.permute.xlu1 %1667 }
  0x8c   : > { %v1670_v24 = vunpack.i.h.bf16 %v1668_v23  ;;  %v1669_v25 = vunpack.i.l.bf16 %v1668_v23 }
  0x8d   : > { %v459_v27 = vsel %vm457_vm2, %v1659_v22, %v1660_v21 }
  0x8e   : > { %v1673_v29 = vpop.permute.xlu0 %1672  ;;  %v1550_v30 = vpack.c.bf16 %v459_v27, %v433_v26  ;;  %v460_v31 = vsel %vm457_vm2, %v1660_v21, %v1670_v24  ;;  %v458_v33 = vsel %vm457_vm2, %v1669_v25, %v1659_v22 }
  0x8f   : > { %v1675_v34 = vunpack.i.h.bf16 %v1673_v29  ;;  %v1674_v35 = vunpack.i.l.bf16 %v1673_v29  ;;  %v1678_v36 = vpop.permute.xlu1 %1677  ;;  %v1566_v37 = vpack.c.bf16 %v460_v31, %v434_v28  ;;  %v1552_v38 = vpack.c.bf16 %v458_v33, %v432_v32  ;;  %v630_v32 = vld [vmem:[%s2182_s2 + $0x8] sm:$0xff] }
  0x90   : > { %v1680_v39 = vunpack.i.h.bf16 %v1678_v36  ;;  %v1679_v40 = vunpack.i.l.bf16 %v1678_v36  ;;  %1551 = vmatprep.subr.bf16.mxu0 %v1550_v30  ;;  %v830_v33 = vlaneseq }
  0x91   : > { %1567 = vmatprep.subr.bf16.mxu1 %v1566_v37  ;;  %1553 = vmatpush1.bf16.msra.mxu0 %v1552_v38  ;;  %v485_v41 = vsel %vm483_vm3, %v1674_v35, %v1675_v34 }
  0x92   : > { %1569 = vmatpush3.bf16.msra.mxu1 %v1566_v37  ;;  %v1683_v42 = vpop.permute.xlu0 %1682  ;;  %v511_v43 = vsel %vm509_vm4, %v1679_v40, %v1680_v39 }
  0x93   : > { %v1685_v44 = vunpack.i.h.bf16 %v1683_v42  ;;  %v1684_v45 = vunpack.i.l.bf16 %v1683_v42  ;;  %v1688_v46 = vpop.permute.xlu1 %1687  ;;  %v1554_v47 = vpack.c.bf16 %v511_v43, %v485_v41 }
  0x94   : > { %v1690_v48 = vunpack.i.h.bf16 %v1688_v46  ;;  %v1689_v49 = vunpack.i.l.bf16 %v1688_v46 }
  0x95   : > { %1555 = vmatprep.subr.bf16.mxu0 %v1554_v47  ;;  %v484_v50 = vsel %vm483_vm3, %v1684_v45, %v1674_v35  ;;  %v486_v51 = vsel %vm483_vm3, %v1675_v34, %v1685_v44  ;;  %v831_v34 = vshrl.u32 %v830_v33, 7 }
  0x96   : > { %v1693_v52 = vpop.permute.xlu0 %1692  ;;  %v510_v53 = vsel %vm509_vm4, %v1689_v49, %v1679_v40  ;;  %v512_v54 = vsel %vm509_vm4, %v1680_v39, %v1690_v48 }
  0x97   : > { %v1695_v55 = vunpack.i.h.bf16 %v1693_v52  ;;  %v1694_v56 = vunpack.i.l.bf16 %v1693_v52  ;;  %v1698_v57 = vpop.permute.xlu1 %1697  ;;  %v1556_v58 = vpack.c.bf16 %v510_v53, %v484_v50  ;;  %v1570_v59 = vpack.c.bf16 %v512_v54, %v486_v51 }
  0x98   : > { %v1700_v60 = vunpack.i.h.bf16 %v1698_v57  ;;  %v1699_v61 = vunpack.i.l.bf16 %v1698_v57  ;;  %v832_v35 = vsub.s32 0, %v831_v34  ;;  %v836_v36 = vsub.s32 1, %v831_v34 }
  0x99   : > { %1557 = vmatpush1.bf16.msra.mxu0 %v1556_v58  ;;  %1571 = vmatprep.subr.bf16.mxu1 %v1570_v59  ;;  %v543_v62 = vsel %vm541_vm5, %v1694_v56, %v1695_v55  ;;  %v840_v41 = vsub.s32 2, %v831_v34 }
  0x9a   : > { %1573 = vmatpush3.bf16.msra.mxu1 %v1570_v59  ;;  %v1703_v63 = vpop.permute.xlu0 %1702  ;;  %v1558_v2 = vpack.c.bf16 %v543_v62, %v1891_v1  ;;  %v544_v3 = vsel %vm541_vm5, %v1695_v55, %v1700_v60  ;;  %v542_v5 = vsel %vm541_vm5, %v1699_v61, %v1694_v56 }
  0x9b   : > { %v1705_v6 = vunpack.i.h.bf16 %v1703_v63  ;;  %v1704_v7 = vunpack.i.l.bf16 %v1703_v63  ;;  %v1708_v8 = vpop.permute.xlu1 %1707  ;;  %v1574_v11 = vpack.c.bf16 %v544_v3, %v1895_v4  ;;  %v1560_v12 = vpack.c.bf16 %v542_v5, %v1889_v0 }
  0x9c   : > { %v1710_v13 = vunpack.i.h.bf16 %v1708_v8  ;;  %v1709_v14 = vunpack.i.l.bf16 %v1708_v8  ;;  %1559 = vmatprep.subr.bf16.mxu0 %v1558_v2 }
  0x9d   : > { %1575 = vmatprep.subr.bf16.mxu1 %v1574_v11  ;;  %1561 = vmatpush1.bf16.msra.mxu0 %v1560_v12  ;;  %v569_v15 = vsel %vm567_vm6, %v1704_v7, %v1705_v6 }
  0x9e   : > { %1577 = vmatpush3.bf16.msra.mxu1 %v1574_v11  ;;  %v560_v1 = vpop.permute.xlu0 %559  ;;  %v595_v16 = vsel %vm593_vm7, %v1709_v14, %v1710_v13 }
  0x9f   : > { %v568_v17 = vsel %vm567_vm6, %v560_v1, %v1704_v7  ;;  %v586_v18 = vpop.permute.xlu1 %585  ;;  %v1562_v19 = vpack.c.bf16 %v595_v16, %v569_v15 }
  0xa0   : > { %v594_v20 = vsel %vm593_vm7, %v586_v18, %v1709_v14 }
  0xa1   : > { %v1564_v4 = vpack.c.bf16 %v594_v20, %v568_v17  ;;  %1563 = vmatprep.subr.bf16.mxu0 %v1562_v19 }
  0xa2   : > { %v614_v0 = vpop.permute.xlu0 %613 }
  0xa3   : > { %v616_v21 = vpop.permute.xlu1 %615  ;;  %1565 = vmatpush1.bf16.msra.mxu0 %v1564_v4 }
  0xa4   : > { %v621_v22 = vsel %vm619_vm8, %v614_v0, %v616_v21 }
  0xa5   : > { %693 = vmatprep.subr.mxu0 %v621_v22 }
  0xa6   : > { %v566_v23 = vpop.permute.xlu0 %565 }
  0xa7   : > { %v570_v24 = vsel %vm567_vm6, %v1705_v6, %v566_v23  ;;  %v592_v25 = vpop.permute.xlu1 %591 }
  0xa8   : > { %v596_v26 = vsel %vm593_vm7, %v1710_v13, %v592_v25 }
  0xa9   : > { %v1578_v27 = vpack.c.bf16 %v596_v26, %v570_v24 }
  0xaa   : > { %v612_v28 = vpop.permute.xlu0 %611 }
  0xab   : > { %v618_v29 = vpop.permute.xlu1 %617  ;;  %1579 = vmatprep.subr.bf16.mxu1 %v1578_v27  ;;  %v620_v30 = vsel %vm619_vm8, %v612_v28, %v614_v0 }
  0xac   : > { %1581 = vmatpush3.bf16.msra.mxu1 %v1578_v27  ;;  %694 = vmatpush1.msra.mxu0 %v620_v30  ;;  %v622_v31 = vsel %vm619_vm8, %v616_v21, %v618_v29 }
  0xad   : > { %1524 = vmatprep.subr.mxu1 %v622_v31  ;;  %1479 = vmatmul.mubr.msk.f32.vlgmr.msra.gmra.mrb[0].mxu0 %vm670_vm0, %v1921_v10  ;;  %v414_v10 = vld [vmem:[%s2181_s1] sm:$0x7] }
  0xae   : > { %747 = vmatprep.mubr.f32.mxu0 %v1804_v9  ;;  %v1979_v38 = vrot.slane %v414_v10, %v832_v35  ;;  %v1981_v40 = vrot.slane %v414_v10, %v836_v36  ;;  %v1989_v49 = vrot.slane %v414_v10, %v840_v41 }
  0xb0   : > { %1525 = vmatpush3.msra.mxu1 %v622_v31 }
  0xb1   : > { %1527 = vmatmul.mubr.msk.f32.vlgmr.msra.gmra.mrb[0].mxu1 %vm670_vm0, %v630_v32  ;;  %1480 = vmatmul.mubr.msk.f32.gmra.mrb[2].mxu0 %vm670_vm0, %v630_v32 }
  0xb2   : > { %1274 = vmatprep.mubr.f32.mxu0 %v1804_v9  ;;  %1547 = vmatprep.mubr.msk.f32.mxu1 %vm1809_vm9, %v1804_v9 }
  0xbb   : > { %v668_v45 = vpop.permute.xlu0 %667 }
  0xbc   : > { %v663_v37 = vpop.permute.xlu1 %662 }
 0x180   : > { %v743_v39 = vpop.f32.mrb[0].mxu0 }
 0x181   : > { %v744_v42 = vadd.f32 %v743_v39, %v663_v37  ;;  %v745_v43 = vpop.f32.mrb[1].mxu0 }
 0x182   : > { %v746_v44 = vadd.f32 %v745_v43, %v663_v37 }
 0x183   : > { %v1984_v46 = vmul.f32 %v1979_v38, %v744_v42 }
 0x184   : > { %v1987_v47 = vmul.f32 %v1981_v40, %v746_v44  ;;  %v1528_v48 = vpop.f32.mrb[0].mxu1  ;;  %v749_v50 = vpop.f32.mrb[2].mxu0 }
 0x185   : > { %v826_v51 = vadd.f32 %v1528_v48, %v668_v45  ;;  %v750_v52 = vadd.f32 %v749_v50, %v668_v45  ;;  %v820_v53 = vpop.f32.mrb[1].mxu1  ;;  %v751_v54 = vpop.f32.mrb[3].mxu0  ;;  %v917_v58 = vmul.f32 %v1984_v46, %v1984_v46 }
 0x186   : > { %v821_v55 = vadd.f32 %v820_v53, %v663_v37  ;;  %v752_v56 = vadd.f32 %v751_v54, %v668_v45  ;;  %v918_v59 = vmul.f32 %v1987_v47, %v1987_v47  ;;  %v905_v13 = vadd.f32 %v1987_v47, %v1984_v46 }
 0x187   : > { %v1992_v57 = vmul.f32 %v1979_v38, %v750_v52  ;;  %v1999_v60 = vmul.f32 %v1989_v49, %v826_v51 }
 0x188   : > { %v2002_v61 = vmul.f32 %v1989_v49, %v821_v55  ;;  %v2005_v62 = vmul.f32 %v1981_v40, %v752_v56  ;;  %v920_v5 = vadd.f32 %v918_v59, %v917_v58 }
 0x189   : > { %v860_v63 = vmul.f32 %v1992_v57, %v1992_v57  ;;  %v862_v7 = vmul.f32 %v1999_v60, %v1999_v60 }
 0x18a   : > { %v848_v2 = vadd.f32 %v2005_v62, %v1992_v57  ;;  %v861_v3 = vmul.f32 %v2005_v62, %v2005_v62  ;;  %v919_v11 = vmul.f32 %v2002_v61, %v2002_v61  ;;  %v906_v15 = vadd.f32 %v905_v13, %v2002_v61 }
 0x18c   : > { %v849_v6 = vadd.f32 %v848_v2, %v1999_v60  ;;  %v863_v8 = vadd.f32 %v861_v3, %v860_v63  ;;  %v921_v14 = vadd.f32 %v920_v5, %v919_v11  ;;  %v947_v63 = vld [vmem:[%s2184_s4] sm:$0xff]  ;;  %v948_v2 = vld [vmem:[%s2184_s4 + $0x8] sm:$0xff]  ;;  %v949_v3 = vld [vmem:[%s2184_s4 + $0x10] sm:$0xff] }
 0x18e   : > { %850 = vadd.xlane.f32.xlu1 %v849_v6  ;;  %v864_v12 = vadd.f32 %v863_v8, %v862_v7  ;;  %v955_v7 = vld [vmem:[%s2185_s5 + $0x10] sm:$0xff] }
 0x190   : > { %865 = vadd.xlane.f32.xlu0 %v864_v12 }
 0x192   : > { %922 = vadd.xlane.f32.xlu1 %v921_v14 }
 0x194   : > { %907 = vadd.xlane.f32.xlu0 %v906_v15 }
 0x21b   : > { %v851_v1 = vpop.xlane.xlu1 %850 }
 0x21c   : > { %v852_v16 = vrot.slane %v851_v1, 4 }
 0x21d   : > { %v866_v17 = vpop.xlane.xlu0 %865 }
 0x21e   : > { %v853_v18 = vadd.f32 %v852_v16, %v851_v1  ;;  %v867_v19 = vrot.slane %v866_v17, 4 }
 0x21f   : > { %v923_v28 = vpop.xlane.xlu1 %922 }
 0x220   : > { %v854_v20 = vrot.slane %v853_v18, 2  ;;  %v868_v4 = vadd.f32 %v867_v19, %v866_v17  ;;  %v924_v30 = vrot.slane %v923_v28, 4  ;;  %v1808_v17 = vmov 0.0|0.0  }
 0x221   : > { %v908_v27 = vpop.xlane.xlu0 %907  ;;  %1598 = vmatprep.subr.bf16.mxu1 %v1808_v17 }
 0x222   : > { %v869_v0 = vrot.slane %v868_v4, 2  ;;  %v855_v21 = vadd.f32 %v854_v20, %v853_v18  ;;  %v909_v29 = vrot.slane %v908_v27, 4  ;;  %v925_v32 = vadd.f32 %v924_v30, %v923_v28 }
 0x224   : > { %v856_v22 = vrot.slane %v855_v21, 1  ;;  %v870_v23 = vadd.f32 %v869_v0, %v868_v4  ;;  %v910_v31 = vadd.f32 %v909_v29, %v908_v27  ;;  %v926_v34 = vrot.slane %v925_v32, 2 }
 0x226   : > { %v857_v24 = vadd.f32 %v856_v22, %v855_v21  ;;  %v871_v25 = vrot.slane %v870_v23, 1  ;;  %v911_v33 = vrot.slane %v910_v31, 2  ;;  %v927_v36 = vadd.f32 %v926_v34, %v925_v32  ;;  %v1201_v21 = vld [vmem:[%s2189_s9] sm:$0xff] }
 0x228   : > { %1612 = vpush %v857_v24  ;;  %v872_v26 = vadd.f32 %v871_v25, %v870_v23  ;;  %v912_v10 = vadd.f32 %v911_v33, %v910_v31  ;;  %v928_v39 = vrot.slane %v927_v36, 1 }
 0x22a   : > { %1614 = vpush %v872_v26  ;;  %v913_v37 = vrot.slane %v912_v10, 1  ;;  %v929_v43 = vadd.f32 %v928_v39, %v927_v36 }
 0x22c   : > { %v914_v42 = vadd.f32 %v913_v37, %v912_v10 }
 0x259   : > { %s1613_s19 = spop %1612 }
 0x25a   : > { %s859_s20 = smul.f32 0.00048828125, %s1613_s19 }
 0x25b   : > { %s1615_s23 = spop %1614 }
 0x25c   : > { %s875_s24 = smul.f32 %s859_s20, %s859_s20  ;;  %v878_v44 = vstv %s859_s20 }
 0x25d   : > { %s874_s25 = smul.f32 0.00048828125, %s1615_s23  ;;  %v879_v45 = vsub.f32 %v1992_v57, %v878_v44  ;;  %v880_v48 = vsub.f32 %v2005_v62, %v878_v44  ;;  %v881_v50 = vsub.f32 %v1999_v60, %v878_v44 }
 0x25f   : > { %s876_s26 = ssub.f32 %s874_s25, %s875_s24 }
 0x261   : > { %s877_s17 = smax.f32 %s2197_s16, %s876_s26 }
 0x262   : > { %s882_s18 = sadd.f32 1e-05, %s877_s17 }
 0x264   : > { %v883_v35 = vstv %s882_s18 }
 0x265   : > { %1783 = vrsqrt.f32 %v883_v35 }
 0x26f   : > { %v1784_v41 = vpop.eup %1783 }
 0x270   : > { %1616 = vpush %v1784_v41 }
 0x271   : > { %1618 = vpush %v914_v42 }
 0x272   : > { %1620 = vpush %v929_v43 }
 0x2a1   : > { %s1617_s19 = spop %1616 }
 0x2a2   : > { %v886_v51 = vstv %s1617_s19  ;;  %s1619_s18 = spop %1618 }
 0x2a3   : > { %v2025_v52 = vmul.f32 %v886_v51, %v879_v45  ;;  %v2027_v53 = vmul.f32 %v886_v51, %v880_v48  ;;  %v2029_v54 = vmul.f32 %v886_v51, %v881_v50  ;;  %s916_s23 = smul.f32 0.00048828125, %s1619_s18  ;;  %s1621_s24 = spop %1620 }
 0x2a4   : > { %s931_s25 = smul.f32 0.00048828125, %s1621_s24 }
 0x2a5   : > { %s932_s26 = smul.f32 %s916_s23, %s916_s23  ;;  %v935_v57 = vstv %s916_s23 }
 0x2a6   : > { %v936_v58 = vsub.f32 %v1984_v46, %v935_v57  ;;  %v937_v59 = vsub.f32 %v1987_v47, %v935_v57  ;;  %v938_v60 = vsub.f32 %v2002_v61, %v935_v57  ;;  %v953_v47 = vld [vmem:[%s2185_s5] sm:$0xff]  ;;  %v954_v61 = vld [vmem:[%s2185_s5 + $0x8] sm:$0xff] }
 0x2a7   : > { %s933_s20 = ssub.f32 %s931_s25, %s932_s26 }
 0x2a9   : > { %s934_s17 = smax.f32 %s2197_s16, %s933_s20 }
 0x2aa   : > { %s939_s15 = sadd.f32 1e-05, %s934_s17  ;;  %s2200_s17 = smov 0.0  }
 0x2ac   : > { %v940_v55 = vstv %s939_s15 }
 0x2ad   : > { %1785 = vrsqrt.f32 %v940_v55 }
 0x2b7   : > { %v1786_v56 = vpop.eup %1785 }
 0x2b8   : > { %1622 = vpush %v1786_v56 }
 0x2e9   : > { %s1623_s19 = spop %1622 }
 0x2ea   : > { %v943_v62 = vstv %s1623_s19 }
 0x2eb   : > { %v944_v5 = vmul.f32 %v943_v62, %v936_v58  ;;  %v945_v46 = vmul.f32 %v943_v62, %v937_v59  ;;  %v946_v6 = vmul.f32 %v943_v62, %v938_v60 }
 0x2ed   : > { %v950_v8 = vmul.f32 %v947_v63, %v944_v5  ;;  %v951_v11 = vmul.f32 %v948_v2, %v945_v46  ;;  %v952_v12 = vmul.f32 %v949_v3, %v946_v6 }
 0x2ef   : > { %v956_v13 = vadd.f32 %v953_v47, %v950_v8  ;;  %v957_v14 = vadd.f32 %v954_v61, %v951_v11  ;;  %v958_v15 = vadd.f32 %v955_v7, %v952_v12 }
 0x2f1   : > { %v2053_v1 = vmax.f32 %v956_v13, 0.0  ;;  %v2055_v16 = vmax.f32 %v957_v14, 0.0  ;;  %v2058_v18 = vmax.f32 %v958_v15, 0.0 }
 0x2f3   : > { %v1718_v19 = vpack.i.bf16 %v2055_v16, %v2053_v1  ;;  %v1723_v20 = vpack.i.bf16 %v2058_v18, %v1804_v9  ;;  %v1753_v4 = vpack.i.bf16 %v2058_v18, %v2055_v16  ;;  %v1758_v0 = vpack.i.bf16 %v1804_v9, %v2053_v1 }
 0x2f5   : > { %1719 = vrot.lane.b32.xlu1 %v1718_v19, %s1798_s28  ;;  %1714 = vrot.lane.b32.xlu0 %v1718_v19, %s1797_s27 }
 0x2f9   : > { %1724 = vrot.lane.b32.xlu1 %v1723_v20, %s1797_s27  ;;  %1729 = vrot.lane.b32.xlu0 %v1723_v20, %s1798_s28  ;;  %s2198_s27 = smov 110   ;;  %s2199_s28 = smov 109  }
 0x2fd   : > { %1734 = vrot.lane.b32.xlu1 %v1718_v19, %s1799_s29  ;;  %1739 = vrot.lane.b32.xlu0 %v1718_v19, %s1800_s30 }
 0x301   : > { %1744 = vrot.lane.b32.xlu1 %v1723_v20, %s1799_s29  ;;  %1749 = vrot.lane.b32.xlu0 %v1723_v20, %s1800_s30 }
 0x305   : > { %1754 = vrot.lane.b32.xlu1 %v1753_v4, %s1801_s13  ;;  %1759 = vrot.lane.b32.xlu0 %v1758_v0, %s1801_s13 }
 0x309   : > { %1764 = vrot.lane.b32.xlu1 %v1753_v4, %s1802_s14  ;;  %1769 = vrot.lane.b32.xlu0 %v1753_v4, %s2198_s27 }
 0x30d   : > { %1774 = vrot.lane.b32.xlu1 %v1758_v0, %s1802_s14  ;;  %1779 = vrot.lane.b32.xlu0 %v1758_v0, %s2198_s27 }
 0x311   : > { %1158 = vrot.lane.b32.xlu1 %v2055_v16, %s2199_s28  ;;  %1160 = vrot.lane.b32.xlu0 %v2058_v18, %s2199_s28 }
 0x315   : > { %1156 = vrot.lane.b32.xlu1 %v2053_v1, %s2199_s28  ;;  %1162 = vrot.lane.b32.xlu0 %v1804_v9, %s2199_s28 }
 0x319   : > { %1204 = vperm.xlu1 %1712, %v1201_v21  }
 0x367   : > { %v1720_v22 = vpop.permute.xlu1 %1719  ;;  %v1715_v23 = vpop.permute.xlu0 %1714 }
 0x368   : > { %v1722_v24 = vunpack.i.h.bf16 %v1720_v22  ;;  %v1721_v25 = vunpack.i.l.bf16 %v1720_v22  ;;  %v1717_v26 = vunpack.i.h.bf16 %v1715_v23  ;;  %v1716_v27 = vunpack.i.l.bf16 %v1715_v23 }
 0x36a   : > { %v984_v28 = vsel %vm431_vm1, %v1716_v27, %v1717_v26  ;;  %v1009_v29 = vsel %vm457_vm2, %v1721_v25, %v1722_v24 }
 0x36b   : > { %v1725_v30 = vpop.permute.xlu1 %1724  ;;  %v1730_v31 = vpop.permute.xlu0 %1729  ;;  %v1582_v32 = vpack.c.bf16 %v1009_v29, %v984_v28 }
 0x36c   : > { %v1727_v33 = vunpack.i.h.bf16 %v1725_v30  ;;  %v1726_v34 = vunpack.i.l.bf16 %v1725_v30  ;;  %v1732_v35 = vunpack.i.h.bf16 %v1730_v31  ;;  %v1731_v10 = vunpack.i.l.bf16 %v1730_v31 }
 0x36d   : > { %1583 = vmatprep.subr.bf16.mxu0 %v1582_v32 }
 0x36e   : > { %v983_v36 = vsel %vm431_vm1, %v1726_v34, %v1716_v27  ;;  %v985_v37 = vsel %vm431_vm1, %v1717_v26, %v1727_v33  ;;  %v1010_v39 = vsel %vm457_vm2, %v1722_v24, %v1732_v35  ;;  %v1008_v41 = vsel %vm457_vm2, %v1731_v10, %v1721_v25 }
 0x36f   : > { %v1584_v42 = vpack.c.bf16 %v1008_v41, %v983_v36  ;;  %v1599_v43 = vpack.c.bf16 %v1010_v39, %v985_v37  ;;  %v1735_v44 = vpop.permute.xlu1 %1734  ;;  %v1740_v45 = vpop.permute.xlu0 %1739 }
 0x370   : > { %v1737_v48 = vunpack.i.h.bf16 %v1735_v44  ;;  %v1736_v50 = vunpack.i.l.bf16 %v1735_v44  ;;  %v1742_v51 = vunpack.i.h.bf16 %v1740_v45  ;;  %v1741_v55 = vunpack.i.l.bf16 %v1740_v45 }
 0x371   : > { %1585 = vmatpush1.bf16.msra.mxu0 %v1584_v42  ;;  %1600 = vmatpush3.bf16.msra.mxu1 %v1599_v43 }
 0x372   : > { %v1034_v56 = vsel %vm483_vm3, %v1736_v50, %v1737_v48  ;;  %v1059_v57 = vsel %vm509_vm4, %v1741_v55, %v1742_v51  ;;  %1601 = vmatprep.subr.bf16.mxu1 %v1808_v17 }
 0x373   : > { %v1745_v58 = vpop.permute.xlu1 %1744  ;;  %v1750_v59 = vpop.permute.xlu0 %1749  ;;  %v1586_v60 = vpack.c.bf16 %v1059_v57, %v1034_v56 }
 0x374   : > { %v1747_v62 = vunpack.i.h.bf16 %v1745_v58  ;;  %v1746_v63 = vunpack.i.l.bf16 %v1745_v58  ;;  %v1752_v2 = vunpack.i.h.bf16 %v1750_v59  ;;  %v1751_v3 = vunpack.i.l.bf16 %v1750_v59 }
 0x375   : > { %1587 = vmatprep.subr.bf16.mxu0 %v1586_v60 }
 0x376   : > { %v1033_v5 = vsel %vm483_vm3, %v1746_v63, %v1736_v50  ;;  %v1035_v46 = vsel %vm483_vm3, %v1737_v48, %v1747_v62  ;;  %v1058_v6 = vsel %vm509_vm4, %v1751_v3, %v1741_v55  ;;  %v1060_v47 = vsel %vm509_vm4, %v1742_v51, %v1752_v2  ;;  %v1173_v48 = vld [vmem:[%s2188_s8] sm:$0xff] }
 0x377   : > { %v1588_v61 = vpack.c.bf16 %v1058_v6, %v1033_v5  ;;  %v1602_v7 = vpack.c.bf16 %v1060_v47, %v1035_v46  ;;  %v1755_v8 = vpop.permute.xlu1 %1754  ;;  %v1760_v11 = vpop.permute.xlu0 %1759 }
 0x378   : > { %v1757_v12 = vunpack.i.h.bf16 %v1755_v8  ;;  %v1756_v13 = vunpack.i.l.bf16 %v1755_v8  ;;  %v1762_v14 = vunpack.i.h.bf16 %v1760_v11  ;;  %v1761_v15 = vunpack.i.l.bf16 %v1760_v11 }
 0x379   : > { %1589 = vmatpush1.bf16.msra.mxu0 %v1588_v61  ;;  %1603 = vmatpush3.bf16.msra.mxu1 %v1602_v7 }
 0x37a   : > { %v1091_v19 = vsel %vm541_vm5, %v1757_v12, %v1762_v14  ;;  %v1089_v20 = vsel %vm541_vm5, %v1761_v15, %v1756_v13  ;;  %1604 = vmatprep.subr.bf16.mxu1 %v1808_v17  ;;  %v1090_v4 = vsel %vm541_vm5, %v1756_v13, %v1757_v12 }
 0x37b   : > { %v1605_v0 = vpack.c.bf16 %v1091_v19, %v2058_v18  ;;  %v1592_v21 = vpack.c.bf16 %v1089_v20, %v2053_v1  ;;  %v1765_v22 = vpop.permute.xlu1 %1764  ;;  %v1770_v23 = vpop.permute.xlu0 %1769  ;;  %v1590_v24 = vpack.c.bf16 %v1090_v4, %v2055_v16 }
 0x37c   : > { %v1767_v25 = vunpack.i.h.bf16 %v1765_v22  ;;  %v1766_v26 = vunpack.i.l.bf16 %v1765_v22  ;;  %v1772_v27 = vunpack.i.h.bf16 %v1770_v23  ;;  %v1771_v28 = vunpack.i.l.bf16 %v1770_v23 }
 0x37d   : > { %1591 = vmatprep.subr.bf16.mxu0 %v1590_v24  ;;  %1606 = vmatpush3.bf16.msra.mxu1 %v1605_v0 }
 0x37e   : > { %1593 = vmatpush1.bf16.msra.mxu0 %v1592_v21  ;;  %v1115_v29 = vsel %vm567_vm6, %v1766_v26, %v1767_v25  ;;  %v1140_v30 = vsel %vm593_vm7, %v1771_v28, %v1772_v27  ;;  %1607 = vmatprep.subr.bf16.mxu1 %v1808_v17 }
 0x37f   : > { %v1775_v18 = vpop.permute.xlu1 %1774  ;;  %v1780_v31 = vpop.permute.xlu0 %1779  ;;  %v1594_v1 = vpack.c.bf16 %v1140_v30, %v1115_v29 }
 0x380   : > { %v1777_v32 = vunpack.i.h.bf16 %v1775_v18  ;;  %v1776_v33 = vunpack.i.l.bf16 %v1775_v18  ;;  %v1782_v34 = vunpack.i.h.bf16 %v1780_v31  ;;  %v1781_v16 = vunpack.i.l.bf16 %v1780_v31 }
 0x381   : > { %1595 = vmatprep.subr.bf16.mxu0 %v1594_v1  ;;  %v1396_v1 = vld [vmem:[%s2190_s10] sm:$0xff] }
 0x382   : > { %v1114_v35 = vsel %vm567_vm6, %v1776_v33, %v1766_v26  ;;  %v1116_v10 = vsel %vm567_vm6, %v1767_v25, %v1777_v32  ;;  %v1139_v36 = vsel %vm593_vm7, %v1781_v16, %v1771_v28  ;;  %v1141_v37 = vsel %vm593_vm7, %v1772_v27, %v1782_v34  ;;  %v890_v26 = vld [vmem:[%s2186_s6] sm:$0xff]  ;;  %v891_v27 = vld [vmem:[%s2186_s6 + $0x8] sm:$0xff]  ;;  %v892_v28 = vld [vmem:[%s2186_s6 + $0x10] sm:$0xff] }
 0x383   : > { %v1596_v39 = vpack.c.bf16 %v1139_v36, %v1114_v35  ;;  %v1608_v41 = vpack.c.bf16 %v1141_v37, %v1116_v10  ;;  %v1159_v42 = vpop.permute.xlu1 %1158  ;;  %v1161_v17 = vpop.permute.xlu0 %1160  ;;  %v1397_v32 = vld [vmem:[%s2190_s10 + $0x8] sm:$0xff]  ;;  %v1398_v33 = vld [vmem:[%s2190_s10 + $0x10] sm:$0xff]  ;;  %v893_v10 = vmul.f32 %v890_v26, %v2025_v52  ;;  %v894_v36 = vmul.f32 %v891_v27, %v2027_v53  ;;  %v1402_v37 = vld [vmem:[%s2191_s11] sm:$0xff] }
 0x384   : > { %v1165_v43 = vsel %vm619_vm8, %v1159_v42, %v1161_v17  ;;  %v896_v52 = vld [vmem:[%s2187_s7] sm:$0xff]  ;;  %v897_v53 = vld [vmem:[%s2187_s7 + $0x8] sm:$0xff] }
 0x385   : > { %1597 = vmatpush1.bf16.msra.mxu0 %v1596_v39  ;;  %1609 = vmatpush3.bf16.msra.mxu1 %v1608_v41  ;;  %v1403_v39 = vld [vmem:[%s2191_s11 + $0x8] sm:$0xff]  ;;  %v1404_v41 = vld [vmem:[%s2191_s11 + $0x10] sm:$0xff] }
 0x386   : > { %1226 = vmatprep.subr.mxu0 %v1165_v43  ;;  %1545 = vmatprep.subr.mxu1 %v1804_v9 }
 0x387   : > { %v1157_v44 = vpop.permute.xlu1 %1156  ;;  %v1163_v45 = vpop.permute.xlu0 %1162 }
 0x388   : > { %v1164_v50 = vsel %vm619_vm8, %v1157_v44, %v1159_v42  ;;  %v1166_v51 = vsel %vm619_vm8, %v1161_v17, %v1163_v45  ;;  %v895_v42 = vmul.f32 %v892_v28, %v2029_v54  ;;  %v898_v45 = vld [vmem:[%s2187_s7 + $0x10] sm:$0xff]  ;;  %v899_v54 = vadd.f32 %v896_v52, %v893_v10 }
 0x389   : > { %1227 = vmatpush1.msra.mxu0 %v1164_v50  ;;  %1546 = vmatpush3.msra.mxu1 %v1166_v51 }
 0x38a   : > { %1483 = vmatmul.mubr.msk.f32.vlgmr.msra.gmra.mrb[4].mxu0 %vm670_vm0, %v1173_v48  ;;  %1548 = vmatmul.mubr.msk.f32.vlgmr.msra.gmra.mrb[2].mxu1 %vm670_vm0, %v1173_v48 }
 0x398   : > { %v1205_v55 = vpop.permute.xlu1 %1204 }
 0x45d   : > { %v1276_v56 = vpop.f32.mrb[4].mxu0  ;;  %v1347_v57 = vpop.f32.mrb[2].mxu1 }
 0x45e   : > { %v1277_v9 = vadd.f32 %v1276_v56, %v1205_v55  ;;  %v1348_v58 = vadd.f32 %v1347_v57, %v1205_v55  ;;  %v1278_v59 = vpop.f32.mrb[5].mxu0  ;;  %v1549_v60 = vpop.f32.mrb[3].mxu1  ;;  %v901_v56 = vadd.f32 %v898_v45, %v895_v42 }
 0x45f   : > { %v1279_v62 = vadd.f32 %v1278_v59, %v1205_v55  ;;  %v900_v55 = vadd.f32 %v897_v53, %v894_v36 }
 0x460   : > { %v1351_v63 = vmul.f32 %v1277_v9, %v1979_v38  ;;  %v1353_v2 = vmul.f32 %v1348_v58, %v1989_v49 }
 0x461   : > { %v1352_v3 = vmul.f32 %v1279_v62, %v1981_v40 }
 0x462   : > { %v1366_v5 = vmul.f32 %v1351_v63, %v1351_v63  ;;  %v1368_v61 = vmul.f32 %v1353_v2, %v1353_v2 }
 0x463   : > { %v1354_v46 = vadd.f32 %v1352_v3, %v1351_v63  ;;  %v1367_v6 = vmul.f32 %v1352_v3, %v1352_v3 }
 0x465   : > { %v1355_v47 = vadd.f32 %v1354_v46, %v1353_v2  ;;  %v1369_v7 = vadd.f32 %v1367_v6, %v1366_v5 }
 0x467   : > { %1356 = vadd.xlane.f32.xlu0 %v1355_v47  ;;  %v1370_v8 = vadd.f32 %v1369_v7, %v1368_v61 }
 0x469   : > { %1371 = vadd.xlane.f32.xlu1 %v1370_v8 }
 0x4f4   : > { %v1357_v11 = vpop.xlane.xlu0 %1356 }
 0x4f5   : > { %v1358_v12 = vrot.slane %v1357_v11, 4 }
 0x4f6   : > { %v1372_v13 = vpop.xlane.xlu1 %1371 }
 0x4f7   : > { %v1359_v14 = vadd.f32 %v1358_v12, %v1357_v11  ;;  %v1373_v15 = vrot.slane %v1372_v13, 4 }
 0x4f9   : > { %v1360_v19 = vrot.slane %v1359_v14, 2  ;;  %v1374_v38 = vadd.f32 %v1373_v15, %v1372_v13 }
 0x4fb   : > { %v1361_v20 = vadd.f32 %v1360_v19, %v1359_v14  ;;  %v1375_v49 = vrot.slane %v1374_v38, 2 }
 0x4fd   : > { %v1376_v4 = vadd.f32 %v1375_v49, %v1374_v38  ;;  %v1362_v40 = vrot.slane %v1361_v20, 1 }
 0x4ff   : > { %v1363_v0 = vadd.f32 %v1362_v40, %v1361_v20  ;;  %v1377_v21 = vrot.slane %v1376_v4, 1 }
 0x501   : > { %1624 = vpush %v1363_v0  ;;  %v1378_v22 = vadd.f32 %v1377_v21, %v1376_v4 }
 0x503   : > { %1626 = vpush %v1378_v22 }
 0x532   : > { %s1625_s16 = spop %1624 }
 0x533   : > { %s1365_s25 = smul.f32 0.00048828125, %s1625_s16 }
 0x534   : > { %s1627_s26 = spop %1626 }
 0x535   : > { %s1381_s15 = smul.f32 %s1365_s25, %s1365_s25  ;;  %v1384_v25 = vstv %s1365_s25 }
 0x536   : > { %s1380_s20 = smul.f32 0.00048828125, %s1627_s26  ;;  %v1385_v29 = vsub.f32 %v1351_v63, %v1384_v25  ;;  %v1386_v30 = vsub.f32 %v1352_v3, %v1384_v25  ;;  %v1387_v18 = vsub.f32 %v1353_v2, %v1384_v25 }
 0x537   : > { %s1611_s25 = smul.u32 24, %s2202_s22 }
 0x538   : > { %s1382_s23 = ssub.f32 %s1380_s20, %s1381_s15 }
 0x53a   : > { %s1383_s19 = smax.f32 %s2200_s17, %s1382_s23  ;;  %s413_s23 = scalar_lea.vmem %s2192_s12, %s1611_s25 }
 0x53b   : > { %s1388_s18 = sadd.f32 1e-05, %s1383_s19 }
 0x53d   : > { %v1389_v23 = vstv %s1388_s18 }
 0x53e   : > { %1787 = vrsqrt.f32 %v1389_v23 }
 0x548   : > { %v1788_v24 = vpop.eup %1787 }
 0x549   : > { %1628 = vpush %v1788_v24 }
 0x57a   : > { %s1629_s14 = spop %1628 }
 0x57b   : > { %v1392_v31 = vstv %s1629_s14 }
 0x57c   : > { %v1393_v34 = vmul.f32 %v1392_v31, %v1385_v29  ;;  %v1394_v16 = vmul.f32 %v1392_v31, %v1386_v30  ;;  %v1395_v35 = vmul.f32 %v1392_v31, %v1387_v18 }
 0x57e   : > { %v1399_v17 = vmul.f32 %v1396_v1, %v1393_v34  ;;  %v1400_v43 = vmul.f32 %v1397_v32, %v1394_v16  ;;  %v1401_v44 = vmul.f32 %v1398_v33, %v1395_v35 }
 0x580   : > { %v1405_v48 = vadd.f32 %v1402_v37, %v1399_v17  ;;  %v1406_v50 = vadd.f32 %v1403_v39, %v1400_v43  ;;  %v1407_v51 = vadd.f32 %v1404_v41, %v1401_v44 }
 0x582   : > { %v1408_v57 = vmax.f32 %v1405_v48, 0.0  ;;  %v1409_v9 = vmax.f32 %v1406_v50, 0.0  ;;  %v1410_v58 = vmax.f32 %v1407_v51, 0.0 }
 0x584   : > { %v1411_v59 = vadd.f32 %v1408_v57, %v899_v54  ;;  %v1412_v60 = vadd.f32 %v1409_v9, %v900_v55  ;;  %v1413_v62 = vadd.f32 %v1410_v58, %v901_v56 }
 0x586   : > { %1414 = vst [vmem:[%s413_s23] sm:$0xff] %v1411_v59  ;;  %1415 = vst [vmem:[%s413_s23 + $0x8] sm:$0xff] %v1412_v60 }
 0x587   : > { %1416 = vst [vmem:[%s413_s23 + $0x10] sm:$0xff] %v1413_v62 }
 0x588 PF: > { %s22_s21 = sadd.s32 1, %s1795_s21  }
 0x589   : > { %p19_p4 = scmp.ge.s32.totalorder %s22_s21, 4  }
 0x58b   :  { %21 = sbr.rel (!%p19_p4) target bundleno = 1 (0x1), region = 98 }

</bundles_post_ra>
